<compile_context>
chip_gen: v5e
topology: v5e:2x2
jax: 0.10.0
libtpu: 0.0.40
codegen_flags: <defaults>
</compile_context>

<pallas_src>
import functools

import jax
import jax.numpy as jnp
from jax.experimental import pallas as pl
from jax.experimental.pallas import tpu as pltpu


def _gap_std_sp_kernel(w_ref, x_ref, o_ref, *, inv_c, inv_cm1):
    # w_ref: SMEM (2,) f32      -- [w_avg, w_std] from Conv2d(2, 1, 1, bias=False)
    # x_ref: VMEM (1, C, T_HW)  -- native dtype tile (C on sublanes, HW on lanes)
    # o_ref: VMEM (1, 1, T_HW)  -- native dtype output tile
    x = x_ref[0].astype(jnp.float32)                       # (C, T_HW)
    s = jnp.sum(x, axis=0, keepdims=True)                  # (1, T_HW) sublane reduce
    sq = jnp.sum(x * x, axis=0, keepdims=True)             # (1, T_HW) sublane reduce
    mean = s * inv_c                                       # torch.mean(dim=1)
    # sum((x - mean)^2) == sum(x^2) - sum(x)*mean ; clamp for fp cancellation
    var = jnp.maximum(sq - s * mean, 0.0) * inv_cm1        # unbiased (torch.std default)
    std = jnp.sqrt(var)
    mixed = w_ref[0] * mean + w_ref[1] * std               # 1x1 conv over the 2 stat maps
    o_ref[...] = jnp.maximum(mixed, 0.0)[None].astype(o_ref.dtype)   # ReLU


def _vmem_capacity_bytes():
    try:
        return int(pltpu.get_tpu_info().vmem_capacity_bytes)
    except Exception:
        return 64 * 1024 * 1024  # conservative: v7x per-TensorCore VMEM


def gap_std_sp(x, conv_weight, *, target_block_bytes=2 * 1024 * 1024,
               vmem_footprint_budget_bytes=None):
    """x: (B, C, H, W); conv_weight: (1, 2, 1, 1) as in nn.Conv2d(2, 1, 1, bias=False).

    Returns (B, 1, H, W), same semantics as GAPnSTD_sp.forward.
    """
    B, C, H, W = x.shape
    HW = H * W
    xf = x.reshape(B, C, HW)                        # native dtype, no HBM upcast copy
    w = conv_weight.reshape(2).astype(jnp.float32)  # [w_avg, w_std]

    in_isz = jnp.dtype(x.dtype).itemsize
    out_isz = in_isz
    f32_isz = 4

    vmem_cap = _vmem_capacity_bytes()
    if vmem_footprint_budget_bytes is None:
        # keep the resident footprint well under capacity on every generation
        vmem_footprint_budget_bytes = min((vmem_cap * 2) // 5, 28 * 1024 * 1024)

    # Per-lane VMEM bytes: double-buffered native input + f32 cast of x + x*x
    # temporary + double-buffered output.
    per_lane = C * (2 * in_isz + 2 * f32_isz) + 2 * out_isz

    # Lane-tile size: aim for ~target_block_bytes per input block, clamped by
    # the VMEM footprint budget; multiple of 128 (or full HW).
    t_hw = min(max(target_block_bytes // max(C * in_isz, 1), 1),
               max(vmem_footprint_budget_bytes // per_lane, 1))
    t_hw = max(128, (t_hw // 128) * 128)

    # v7x megacore: with B == 1 make sure the spatial axis yields >= 2 programs.
    if B == 1 and HW >= 256:
        t_hw = min(t_hw, ((HW // 2) // 128) * 128)

    if t_hw >= HW:
        t_hw = HW                                   # full-extent block is always legal
    n_hw = pl.cdiv(HW, t_hw)                        # uneven last tile handled by Pallas
    # (OOB input lanes = garbage but never reduced across lanes; OOB output
    #  lanes masked on writeback)

    # Actual per-step footprint -> explicit scoped-VMEM limit with headroom.
    footprint = (2 * C * t_hw * in_isz              # double-buffered input block
                 + 2 * C * t_hw * f32_isz           # f32 cast + x*x intermediates
                 + 2 * t_hw * out_isz)              # double-buffered output block
    vmem_limit = int(min(max(2 * footprint + (4 << 20), 16 << 20),
                         (vmem_cap * 3) // 4))

    cost = pl.CostEstimate(
        flops=int(6 * B * C * HW),                  # sum, sumsq, sub, 2 FMA-ish per elem
        transcendentals=int(B * HW),                # sqrt per output pixel
        bytes_accessed=int(B * C * HW * in_isz + B * HW * out_isz + 8),
    )

    kernel = functools.partial(
        _gap_std_sp_kernel,
        inv_c=1.0 / C,
        inv_cm1=1.0 / max(C - 1, 1),
    )

    out = pl.pallas_call(
        kernel,
        out_shape=jax.ShapeDtypeStruct((B, 1, HW), x.dtype),
        grid=(B, n_hw),
        in_specs=[
            pl.BlockSpec(memory_space=pltpu.MemorySpace.SMEM),      # (2,) conv weights
            pl.BlockSpec((1, C, t_hw), lambda b, j: (b, 0, j)),     # one (C, T_HW) tile
        ],
        out_specs=pl.BlockSpec((1, 1, t_hw), lambda b, j: (b, 0, j)),
        compiler_params=pltpu.CompilerParams(
            dimension_semantics=("parallel", "parallel"),
            vmem_limit_bytes=vmem_limit),
        cost_estimate=cost,
    )(w, xf)

    return out.reshape(B, 1, H, W)


def gap_std_sp_reference(x, conv_weight):
    """Pure-JAX reference mirroring the PyTorch forward exactly."""
    xf = x.astype(jnp.float32)
    avg_out = jnp.mean(xf, axis=1, keepdims=True)                   # (B, 1, H, W)
    std_out = jnp.std(xf, axis=1, keepdims=True, ddof=1)            # torch.std (unbiased)
    spatial = jnp.concatenate((avg_out, std_out), axis=1)           # (B, 2, H, W)
    w = conv_weight.reshape(1, 2, 1, 1).astype(jnp.float32)
    conv = jnp.sum(spatial * w, axis=1, keepdims=True)              # 1x1 conv, no bias
    return jnp.maximum(conv, 0.0).astype(x.dtype)                   # ReLU


if __name__ == "__main__":
    key = jax.random.PRNGKey(0)
    k1, k2, k3, k_w = jax.random.split(key, 4)

    # deterministic synthetic init for nn.Conv2d(2, 1, 1, bias=False) weight
    conv_weight = jax.random.normal(k_w, (1, 2, 1, 1), dtype=jnp.float32) * 0.5

    # 1) main small case (B=2, C=4, 16x16): single full-extent spatial tile
    x1 = jax.random.normal(k1, (2, 4, 16, 16), dtype=jnp.float32)
    o1 = jax.block_until_ready(gap_std_sp(x1, conv_weight))
    r1 = gap_std_sp_reference(x1, conv_weight)
    assert o1.shape == (2, 1, 16, 16), o1.shape
    assert jnp.allclose(o1, r1, atol=1e-5, rtol=1e-5)

    # 2) B == 1 path: spatial axis split into >= 2 tiles (v7x megacore)
    x2 = jax.random.normal(k2, (1, 8, 32, 32), dtype=jnp.float32)
    o2 = jax.block_until_ready(gap_std_sp(x2, conv_weight))
    r2 = gap_std_sp_reference(x2, conv_weight)
    assert o2.shape == (1, 1, 32, 32), o2.shape
    assert jnp.allclose(o2, r2, atol=1e-5, rtol=1e-5)

    # 3) uneven spatial extent (HW=400 not a multiple of the 128-lane tile):
    #    forces the no-pad / OOB-masked last block path.
    x3 = jax.random.normal(k3, (2, 4, 20, 20), dtype=jnp.float32)
    o3 = jax.block_until_ready(gap_std_sp(x3, conv_weight, target_block_bytes=2048))
    r3 = gap_std_sp_reference(x3, conv_weight)
    assert o3.shape == (2, 1, 20, 20), o3.shape
    assert jnp.allclose(o3, r3, atol=1e-5, rtol=1e-5)

    print("KERNEL_OK")
</pallas_src>

<mosaic_0001>
module attributes {stable_mosaic.version = 11 : i64} {
  func.func @_gap_std_sp_kernel(%arg0: i32, %arg1: i32, %arg2: memref<2xf32, #tpu.memory_space<smem>>, %arg3: memref<1x4x256xf32, #tpu.memory_space<vmem>>, %arg4: memref<1x1x256xf32, #tpu.memory_space<vmem>>) attributes {dimension_semantics = [#tpu.dimension_semantics<parallel>, #tpu.dimension_semantics<parallel>], iteration_bounds = array<i64: 2, 1>, scalar_prefetch = 0 : i64, scratch_operands = 0 : i64, tpu.core_type = #tpu.core_type<tc>, window_params = [{transform_indices = @transform_0, window_bounds = array<i64: 2>}, {transform_indices = @transform_1, window_bounds = array<i64: 1, 4, 256>}, {transform_indices = @transform_2, window_bounds = array<i64: 1, 1, 256>}]} {
    %c0 = arith.constant 0 : index
    %c0_0 = arith.constant 0 : index
    %c0_1 = arith.constant 0 : index
    %0 = vector.load %arg3[%c0, %c0_0, %c0_1] : memref<1x4x256xf32, #tpu.memory_space<vmem>>, vector<1x4x256xf32>
    %1 = vector.shape_cast %0 : vector<1x4x256xf32> to vector<4x256xf32>
    %cst = arith.constant dense<0.000000e+00> : vector<256xf32>
    %2 = vector.multi_reduction <add>, %1, %cst [0] : vector<4x256xf32> to vector<256xf32>
    %3 = vector.shape_cast %2 : vector<256xf32> to vector<1x256xf32>
    %4 = arith.mulf %1, %1 : vector<4x256xf32>
    %cst_2 = arith.constant dense<0.000000e+00> : vector<256xf32>
    %5 = vector.multi_reduction <add>, %4, %cst_2 [0] : vector<4x256xf32> to vector<256xf32>
    %6 = vector.shape_cast %5 : vector<256xf32> to vector<1x256xf32>
    %cst_3 = arith.constant 2.500000e-01 : f32
    %7 = vector.broadcast %cst_3 : f32 to vector<1x256xf32>
    %8 = arith.mulf %3, %7 : vector<1x256xf32>
    %9 = arith.mulf %3, %8 : vector<1x256xf32>
    %10 = arith.subf %6, %9 : vector<1x256xf32>
    %cst_4 = arith.constant 0.000000e+00 : f32
    %11 = vector.broadcast %cst_4 : f32 to vector<1x256xf32>
    %12 = arith.maximumf %10, %11 : vector<1x256xf32>
    %cst_5 = arith.constant 0.333333343 : f32
    %13 = vector.broadcast %cst_5 : f32 to vector<1x256xf32>
    %14 = arith.mulf %12, %13 : vector<1x256xf32>
    %15 = math.sqrt %14 : vector<1x256xf32>
    %c0_6 = arith.constant 0 : index
    %16 = memref.load %arg2[%c0_6] : memref<2xf32, #tpu.memory_space<smem>>
    %17 = vector.broadcast %16 : f32 to vector<1x256xf32>
    %18 = arith.mulf %17, %8 : vector<1x256xf32>
    %c1 = arith.constant 1 : index
    %19 = memref.load %arg2[%c1] : memref<2xf32, #tpu.memory_space<smem>>
    %20 = vector.broadcast %19 : f32 to vector<1x256xf32>
    %21 = arith.mulf %20, %15 : vector<1x256xf32>
    %22 = arith.addf %18, %21 : vector<1x256xf32>
    %cst_7 = arith.constant 0.000000e+00 : f32
    %23 = vector.broadcast %cst_7 : f32 to vector<1x256xf32>
    %24 = arith.maximumf %22, %23 : vector<1x256xf32>
    %25 = vector.shape_cast %24 : vector<1x256xf32> to vector<1x1x256xf32>
    %c0_8 = arith.constant 0 : index
    %c0_9 = arith.constant 0 : index
    %c0_10 = arith.constant 0 : index
    %26 = vector.load %arg4[%c0_8, %c0_9, %c0_10] : memref<1x1x256xf32, #tpu.memory_space<vmem>>, vector<1x1x256xf32>
    tpu.vector_store %arg4[%c0_8, %c0_9, %c0_10], %25 {strides = array<i32>} : memref<1x1x256xf32, #tpu.memory_space<vmem>>, vector<1x1x256xf32>,
    return
  }
  func.func @transform_0(%arg0: i32, %arg1: i32) -> i32 {
    %c0_i32 = arith.constant 0 : i32
    %c0_i32_0 = arith.constant 0 : i32
    return %c0_i32 : i32
  }
  func.func @transform_1(%arg0: i32, %arg1: i32) -> (i32, i32, i32) {
    %c0_i32 = arith.constant 0 : i32
    %c0_i32_0 = arith.constant 0 : i32
    return %arg0, %c0_i32, %arg1 : i32, i32, i32
  }
  func.func @transform_2(%arg0: i32, %arg1: i32) -> (i32, i32, i32) {
    %c0_i32 = arith.constant 0 : i32
    %c0_i32_0 = arith.constant 0 : i32
    return %arg0, %c0_i32, %arg1 : i32, i32, i32
  }
}

</mosaic_0001>

<bundles_post_ra>
// kernel: tpu_custom_call.1
= control target key start
LH: loop header
LB: loop body
LE: loop exit
PB: predicated region body
PF: predicated region fallthrough
CT: control target
= control target key end

     0   :  { %7 = vsyncpa [#allocation5], 0  ;;  %s803_s0 = inlined_call_operand.hbm [shape: f32[2], index: 0, kind: input, shape index: {}]   ;;  %s804_s1 = inlined_call_operand.hbm [shape: f32[2,4,256], index: 1, kind: input, shape index: {}]   ;;  %s805_s2 = inlined_call_operand.hbm [shape: f32[2,1,256], index: 2, kind: output, shape index: {}]  }
   0x1   :  { %8 = vsyncpa [#allocation3], 0 }
   0x2   :  { %10 = vsyncpa [#allocation3 + $0x1], 0 }
   0x3   :  { %11 = vsyncpa [#allocation4], 0 }
   0x4   :  { %13 = vsyncpa [#allocation4 + $0x1], 0  ;;  %s653_s9 = smov 0   ;;  %s655_s10 = smov 0  }
   0x5   :  { %s657_s11 = smov 0   ;;  %s659_s12 = smov 0  }
   0x6   :  { %s661_s13 = smov 0   ;;  %s663_s14 = smov 0  }
   0x7 LB: > { %s409_s15 = sadd.s32 4294967295, %s635_s14   ;;  %s410_s16 = sadd.s32 4294967294, %s635_s14   ;;  %s635_s14 = sphi %s663_s14, %s19_s14   ;;  %s631_s13 = sphi %s661_s13, %s817_s13   ;;  %s627_s12 = sphi %s659_s12, %s816_s12   ;;  %s623_s11 = sphi %s657_s11, %s815_s11   ;;  %s619_s10 = sphi %s655_s10, %s814_s10   ;;  %s615_s9 = sphi %s653_s9, %s813_s9  }
   0x8   : > { %p74_p0 = scmp.ne.s32.totalorder %s619_s10, %s615_s9  ;;  %p687_p1 = scmp.eq.s32.totalorder %s409_s15, 0 }
   0x9   : > { %p691_p2 = scmp.eq.s32.totalorder %s409_s15, 1  ;;  %p106_p3 = scmp.eq.s32.totalorder %s410_s16, 1 }
   0xa   : > { %p697_p4 = por %p687_p1, %p74_p0  ;;  %p411_p5 = scmp.ge.s32.totalorder %s635_s14, 1 }
   0xb   : > { %p702_p6 = por %p106_p3, %p74_p0  ;;  %p113_p7 = scmp.lt.s32.totalorder %s635_s14, 3 }
   0xc   : > { %s125_s23 = sshll.u32 %s803_s0, 4  ;;  %s31_s25 = sadd.s32 1, %s631_s13  ;;  %s126_s23 = int_to_ptr.hbm [resolvable:$true] %s125_s23 }
   0xd   : > { %p710_p8 = pnand %p411_p5, %p113_p7  ;;  %s61_s26 = sadd.s32 1, %s623_s11 }
   0xe   : > { %p33_p12 = scmp.ge.s32.totalorder %s31_s25, 2  ;;  %s637_s27 = smov [#allocation2]  }
   0xf   : > { %p435_p10 = pneg %p710_p8  ;;  %p68_p13 = scmp.ne.s32.totalorder %s623_s11, %s619_s10 }
  0x10   : > { %s819_s25 = smov (%p33_p12, %s31_s25), 0  ;;  %p69_p0 = scmp.eq.s32.totalorder %s635_s14, 0 }
  0x11   : > { %p436_p11 = pnand %p435_p10, %p687_p1  ;;  %s56_s28 = ssub.s32 %s631_s13, %s819_s25 }
  0x12   : > { %p448_p3 = scmp.lt.s32.totalorder %s635_s14, 2  ;;  %p59_p5 = scmp.eq.s32.totalorder %s56_s28, 0 }
  0x13   : > { %438 = dma.hbm_to_smem (!%p436_p11), %s126_s23, 16, %s637_s27, [#allocation5]  }
  0x14   : > { %p70_p7 = por %p69_p0, %p68_p13  ;;  %p731_p9 = por %p691_p2, %p68_p13 }
  0x15   : > { %s136_s30 = sand.u32 1, %s623_s11   ;;  %s426_s5 = sshll.u32 %s631_s13, 3 }
  0x16   : > { %s737_s3 = scalar_select %p59_p5, %s623_s11, %s61_s26  }
  0x17   : > { %s414_s4 = sshll.u32 %s136_s30, 3  ;;  %s147_s8 = scalar_lea.hbm %s804_s1, %s426_s5 }
  0x18   : > { %s140_s15 = scalar_lea.vmem [#allocation6], %s414_s4  ;;  %s149_s21 = sshll.u32 %s147_s8, 4  ;;  %s150_s21 = int_to_ptr.hbm [resolvable:$true] %s149_s21 }
  0x19   : > { %s151_s16 = sshll.u32 %s140_s15, 4  ;;  %p440_p10 = pnand %p448_p3, %p70_p7  ;;  %s152_s16 = int_to_ptr.vmem [resolvable:$true] %s151_s16 }
  0x1a   : > { %s137_s18 = scalar_lea.sflag [#allocation3], %s136_s30  ;;  %160 = sbr.rel (%p710_p8) target bundleno = 108 (0x6c), region = 28 }
  0x1b   : > { %442 = dma.hbm_to_vmem [thread:$0]  (!%p440_p10), %s150_s21, 128, %s152_s16, %s137_s18  }
  0x1f   : > { %602 = dma.done.wait (%p687_p1), [#allocation5], 16  }
  0x20   : > { %604 = vsyncadd (%p687_p1), [#allocation5], 4294967280  ;;  %s752_s22 = sand.u32 1, %s619_s10  }
  0x21   : > { %s419_s23 = sshll.u32 %s752_s22, 3  ;;  %s168_s26 = scalar_lea.sflag [#allocation3], %s752_s22 }
  0x22   : > { %s171_s27 = scalar_lea.vmem [#allocation6], %s419_s23 }
  0x23   : > { %606 = dma.done.wait (%p697_p4), %s168_s26, 128  }
  0x24   : > { %608 = vsyncadd (%p697_p4), %s168_s26, 4294967168 }
  0x25   : > { %177 = sfence }
  0x26   : > { %v196_v0 = vld [vmem:[%s171_s27] sm:$0xff]  ;;  %vm203_vm0 = vcmask 1043456   ;;  %s273_s17 = sld [smem:[#allocation2]]  ;;  %s420_s24 = sshll.u32 %s752_s22, 1  ;;  %vm288_vm5 = vcmask 1040384  }
  0x27   : > { %198 = vst [vmem:[#allocation1] ss:$2 sm:$0xff] %v196_v0  ;;  %v218_v1 = vmul.f32 %v196_v0, %v196_v0  ;;  %s421_s19 = sld [smem:[#allocation2 + $0x1]]  ;;  %s423_s28 = sshll.u32 %s627_s12, 1 }
  0x28   : > { %s309_s5 = scalar_lea.hbm %s805_s2, %s423_s28  ;;  %s193_s6 = scalar_lea.vmem [#allocation7], %s420_s24 }
  0x29   : > { %s311_s7 = sshll.u32 %s193_s6, 4  ;;  %s313_s8 = sshll.u32 %s309_s5, 4  ;;  %s312_s7 = int_to_ptr.vmem [resolvable:$true] %s311_s7  ;;  %s314_s8 = int_to_ptr.hbm [resolvable:$true] %s313_s8 }
  0x2a   : > { %s297_s12 = scalar_lea.sflag [#allocation4], %s752_s22  ;;  %s563_s15 = sshra.s32 %s314_s8, 4  ;;  %s564_s15 = int_to_ptr.hbm [resolvable:$true] %s563_s15 }
  0x2b   : > { %s565_s16 = scalar_lea.hbm %s564_s15, 2  ;;  %s569_s23 = scalar_lea.hbm %s805_s2, 4 }
  0x2c   : > { %v274_v57 = vstv %s273_s17  ;;  %p566_p1 = scmp.ne.s32.totalorder %s564_s15, %s565_s16  ;;  %p570_p8 = scmp.lt.s32.totalorder %s564_s15, %s805_s2 }
  0x2d   : > { %v278_v60 = vstv %s421_s19  ;;  %p571_p11 = scmp.lt.s32.totalorder %s569_s23, %s565_s16 }
  0x2e   : > { %v199_v2 = vld.sshfl [vmem:[#allocation1] sm:$0xff pattern:$0x75316420]  ;;  %v200_v3 = vld.sshfl [vmem:[#allocation1 + $0x8] sm:$0xff pattern:$0x75316420]  ;;  %p567_p2 = pnand %p566_p1, %p731_p9 }
  0x2f   : > { %v204_v4 = vsel %vm203_vm0, %v199_v2, 0.0  ;;  %v211_v5 = vsel %vm203_vm0, %v200_v3, 0.0  ;;  %220 = vst [vmem:[#allocation1] ss:$2 sm:$0xff] %v218_v1  ;;  %p572_p12 = por %p571_p11, %p570_p8 }
  0x30   : > { %v205_v6 = vrot.slane %v204_v4, 4  ;;  %v212_v7 = vrot.slane %v211_v5, 4  ;;  %p568_p4 = pneg %p567_p2 }
  0x32   : > { %v206_v8 = vadd.f32 %v205_v6, %v204_v4  ;;  %v213_v9 = vadd.f32 %v212_v7, %v211_v5  ;;  %p573_p13 = pnand %p572_p12, %p568_p4 }
  0x34   : > { %v207_v10 = vrot.slane %v206_v8, 2  ;;  %v214_v11 = vrot.slane %v213_v9, 2 }
  0x36   : > { %v208_v12 = vadd.f32 %v207_v10, %v206_v8  ;;  %v215_v13 = vadd.f32 %v214_v11, %v213_v9  ;;  %v221_v14 = vld.sshfl [vmem:[#allocation1] sm:$0xff pattern:$0x75316420]  ;;  %v222_v15 = vld.sshfl [vmem:[#allocation1 + $0x8] sm:$0xff pattern:$0x75316420]  ;;  %v291_v8 = vlaneseq }
  0x37   : > { %v225_v16 = vsel %vm203_vm0, %v221_v14, 0.0  ;;  %v232_v17 = vsel %vm203_vm0, %v222_v15, 0.0 }
  0x38   : > { %v209_v18 = vrot.slane %v208_v12, 1  ;;  %v216_v19 = vrot.slane %v215_v13, 1  ;;  %v226_v20 = vrot.slane %v225_v16, 4  ;;  %v233_v21 = vrot.slane %v232_v17, 4 }
  0x39   : > { %vm293_vm6 = vcmp.lt.s32.totalorder %v291_v8, 256 }
  0x3a   : > { %v210_v22 = vadd.f32 %v209_v18, %v208_v12  ;;  %v217_v23 = vadd.f32 %v216_v19, %v215_v13  ;;  %v227_v24 = vadd.f32 %v226_v20, %v225_v16  ;;  %v234_v25 = vadd.f32 %v233_v21, %v232_v17 }
  0x3c   : > { %v228_v26 = vrot.slane %v227_v24, 2  ;;  %v235_v27 = vrot.slane %v234_v25, 2  ;;  %v239_v30 = vmul.f32 0.25, %v210_v22  ;;  %v240_v31 = vmul.f32 0.25, %v217_v23 }
  0x3e   : > { %v229_v28 = vadd.f32 %v228_v26, %v227_v24  ;;  %v236_v29 = vadd.f32 %v235_v27, %v234_v25  ;;  %v241_v36 = vmul.f32 %v239_v30, %v210_v22  ;;  %v242_v37 = vmul.f32 %v240_v31, %v217_v23 }
  0x3f   : > { %v275_v3 = vmul.f32 %v274_v57, %v239_v30  ;;  %v276_v4 = vmul.f32 %v274_v57, %v240_v31 }
  0x40   : > { %v230_v32 = vrot.slane %v229_v28, 1  ;;  %v237_v33 = vrot.slane %v236_v29, 1 }
  0x42   : > { %v231_v34 = vadd.f32 %v230_v32, %v229_v28  ;;  %v238_v35 = vadd.f32 %v237_v33, %v236_v29 }
  0x44   : > { %v243_v38 = vsub.f32 %v231_v34, %v241_v36  ;;  %v244_v39 = vsub.f32 %v238_v35, %v242_v37 }
  0x46   : > { %v245_v40 = vmax.f32 %v243_v38, 0.0  ;;  %v246_v41 = vmax.f32 %v244_v39, 0.0 }
  0x48   : > { %v247_v42 = vmul.f32 0.33333334, %v245_v40  ;;  %v248_v43 = vmul.f32 0.33333334, %v246_v41 }
  0x4a   : > { %500 = vrsqrt.f32 %v247_v42  ;;  %vm256_vm1 = vcmp.eq.f32.partialorder %v247_v42, inf  ;;  %v259_v58 = vand.u32 2147483648, %v247_v42  ;;  %vm258_vm2 = vcmp.eq.f32.partialorder %v247_v42, 0.0 }
  0x4b   : > { %502 = vrsqrt.f32 %v248_v43  ;;  %vm268_vm3 = vcmp.eq.f32.partialorder %v248_v43, inf  ;;  %v271_v62 = vand.u32 2147483648, %v248_v43  ;;  %vm270_vm4 = vcmp.eq.f32.partialorder %v248_v43, 0.0 }
  0x50   : > { %v501_v44 = vpop.eup %500 }
  0x51   : > { %v503_v45 = vpop.eup %502  ;;  %v250_v46 = vmul.f32 %v501_v44, %v247_v42 }
  0x52   : > { %v262_v47 = vmul.f32 %v503_v45, %v248_v43 }
  0x53   : > { %v251_v48 = vmul.f32 %v501_v44, %v250_v46 }
  0x54   : > { %v263_v49 = vmul.f32 %v503_v45, %v262_v47 }
  0x55   : > { %v252_v50 = vmul.f32 0.5, %v251_v48 }
  0x56   : > { %v264_v51 = vmul.f32 0.5, %v263_v49 }
  0x57   : > { %v253_v52 = vsub.f32 1.5, %v252_v50 }
  0x58   : > { %v265_v53 = vsub.f32 1.5, %v264_v51 }
  0x59   : > { %v254_v54 = vmul.f32 %v501_v44, %v253_v52 }
  0x5a   : > { %v266_v55 = vmul.f32 %v503_v45, %v265_v53 }
  0x5b   : > { %v255_v56 = vmul.f32 %v254_v54, %v247_v42 }
  0x5c   : > { %v267_v59 = vmul.f32 %v266_v55, %v248_v43 }
  0x5d   : > { %v257_v61 = vsel %vm256_vm1, %v247_v42, %v255_v56 }
  0x5e   : > { %v260_v63 = vsel %vm258_vm2, %v259_v58, %v257_v61  ;;  %v269_v0 = vsel %vm268_vm3, %v248_v43, %v267_v59 }
  0x5f   : > { %v272_v1 = vsel %vm270_vm4, %v271_v62, %v269_v0  ;;  %v279_v2 = vmul.f32 %v278_v60, %v260_v63 }
  0x60   : > { %v280_v5 = vmul.f32 %v278_v60, %v272_v1 }
  0x61   : > { %v281_v6 = vadd.f32 %v279_v2, %v275_v3 }
  0x62   : > { %v282_v7 = vadd.f32 %v280_v5, %v276_v4 }
  0x63   : > { %v283_v10 = vmax.f32 %v281_v6, 0.0 }
  0x64   : > { %v284_v9 = vmax.f32 %v282_v7, 0.0 }
  0x66   : > { %v287_v11 = vrot.slane %v284_v9, 7 }
  0x68   : > { %v289_v12 = vsel %vm288_vm5, %v283_v10, %v287_v11 }
  0x69   : > { %295 = vst.msk [vmem:[%s193_s6] sm:$0x3] %vm293_vm6, %v289_v12 }
  0x6a   : > { %576 = shalt.err (!%p573_p13)
}
  0x6b   : > { %433 = dma.vmem_to_hbm [thread:$0]  (%p731_p9), %s312_s7, 32, %s314_s8, %s297_s12  }
  0x6c PF: > { %s325_s22 = sand.u32 1, %s615_s9   ;;  %p812_p0 = scmp.ge.s32.totalorder %s635_s14, 2 }
  0x6d   : > { %s326_s17 = scalar_lea.sflag [#allocation4], %s325_s22 }
  0x6e   : > { %p444_p3 = pnand %p812_p0, %p702_p6 }
  0x70   : > { %p445_p5 = pneg %p444_p3 }
  0x72   : > { %610 = dma.done.wait (%p445_p5), %s326_s17, 32  }
  0x73   : > { %612 = vsyncadd (%p445_p5), %s326_s17, 4294967264  ;;  %s19_s14 = sadd.s32 1, %s635_s14   ;;  %s813_s9 = smov %s619_s10 }
  0x74   : > { %p16_p7 = scmp.ge.s32.totalorder %s19_s14, 4   ;;  %s814_s10 = smov %s623_s11 }
  0x75   : > { %s815_s11 = smov %s737_s3  ;;  %s816_s12 = smov %s631_s13 }
  0x76   : > { %s817_s13 = smov %s819_s25  ;;  %18 = sbr.rel (!%p16_p7) target bundleno = 7 (0x7), region = 78 }
  0x7b   :  { %332 = vsyncpa [#allocation3], 1 }
  0x7c   :  { %334 = vsyncpa [#allocation3 + $0x1], 1 }
  0x7d   :  { %335 = vsyncpa [#allocation4], 1 }
  0x7e   :  { %337 = vsyncpa [#allocation4 + $0x1], 1 }
  0x7f   :  { %338 = vsyncpa [#allocation5], 1 }
  0x80   :  { %340 = vsyncpa [#allocation5 + $0x1], 1 }

</bundles_post_ra>
